<compile_context>
chip_gen: v7x
topology: tpu7x:2x2x1
jax: 0.10.0
libtpu: 0.0.40
codegen_flags: <defaults>
</compile_context>

<pallas_src>
import functools
import numpy as np
import jax
import jax.numpy as jnp
from jax.experimental import pallas as pl
from jax.experimental.pallas import tpu as pltpu

_EPS = 1e-5

_TM_CAP = 256     # M tile cap
_TN_CAP = 256     # N tile cap (multiple of 256 keeps the v6e/v7x MXU full)
_TK_CAP = 1024    # K tile cap
_LANE = 128
_SUBLANE = 16     # bf16 sublane packing


def _round_up(x, m):
    return ((x + m - 1) // m) * m


def _pick_tile(dim, cap, mult):
    """Return (tile, padded_dim): tile <= cap, multiple of mult, divides padded_dim."""
    d = _round_up(dim, mult)
    if d <= cap:
        return d, d
    t = (cap // mult) * mult
    while t >= mult:
        if d % t == 0:
            return t, d
        t -= mult
    t = (cap // mult) * mult
    return t, _round_up(d, t)


# ----------------------------- Pallas kernels ------------------------------

def _mm_bias_kernel(x_ref, w_ref, b_ref, o_ref, acc_ref, *, relu):
    # bf16 x bf16 -> f32 MXU matmul tile, accumulated over the K grid axis.
    @pl.when(pl.program_id(2) == 0)
    def _init():
        acc_ref[...] = jnp.zeros_like(acc_ref)

    acc_ref[...] += jnp.dot(x_ref[...], w_ref[...],
                            preferred_element_type=jnp.float32)

    @pl.when(pl.program_id(2) == pl.num_programs(2) - 1)
    def _finalize():
        y = acc_ref[...] + b_ref[...]
        if relu:
            y = jnp.maximum(y, 0.0)
        o_ref[...] = y.astype(o_ref.dtype)


def _mm_bias_res_kernel(x_ref, w_ref, b_ref, r_ref, o_ref, acc_ref, *, relu):
    @pl.when(pl.program_id(2) == 0)
    def _init():
        acc_ref[...] = jnp.zeros_like(acc_ref)

    acc_ref[...] += jnp.dot(x_ref[...], w_ref[...],
                            preferred_element_type=jnp.float32)

    @pl.when(pl.program_id(2) == pl.num_programs(2) - 1)
    def _finalize():
        y = acc_ref[...] + b_ref[...] + r_ref[...].astype(jnp.float32)
        if relu:
            y = jnp.maximum(y, 0.0)
        o_ref[...] = y.astype(o_ref.dtype)


# ----------------------------- fused GEMM wrapper ---------------------------

def matmul_bias_act(x2d, w2d, bias, *, relu=False, residual=None,
                    out_dtype=jnp.bfloat16):
    """(M,K) @ (K,N) + bias [+ residual] [+ ReLU] as a tiled Pallas GEMM."""
    m, k = x2d.shape
    k2, n = w2d.shape
    assert k == k2 and bias.shape == (1, n)

    tm, mp = _pick_tile(m, _TM_CAP, _SUBLANE)
    tn, npd = _pick_tile(n, _TN_CAP, _LANE)
    tk, kp = _pick_tile(k, _TK_CAP, _LANE)

    xp = x2d.astype(jnp.bfloat16)
    if (mp, kp) != (m, k):
        xp = jnp.pad(xp, ((0, mp - m), (0, kp - k)))
    wp = w2d.astype(jnp.bfloat16)
    if (kp, npd) != (k, n):
        wp = jnp.pad(wp, ((0, kp - k), (0, npd - n)))
    bp = bias.astype(jnp.float32)
    if npd != n:
        bp = jnp.pad(bp, ((0, 0), (0, npd - n)))

    grid = (mp // tm, npd // tn, kp // tk)
    x_spec = pl.BlockSpec((tm, tk), lambda i, j, kk: (i, kk))
    w_spec = pl.BlockSpec((tk, tn), lambda i, j, kk: (kk, j))   # ignores M axis
    b_spec = pl.BlockSpec((1, tn), lambda i, j, kk: (0, j))     # ignores M, K
    o_spec = pl.BlockSpec((tm, tn), lambda i, j, kk: (i, j))
    cparams = pltpu.CompilerParams(
        dimension_semantics=("parallel", "parallel", "arbitrary"))

    if residual is None:
        out = pl.pallas_call(
            functools.partial(_mm_bias_kernel, relu=relu),
            out_shape=jax.ShapeDtypeStruct((mp, npd), out_dtype),
            grid_spec=pltpu.PrefetchScalarGridSpec(
                num_scalar_prefetch=0, grid=grid,
                in_specs=[x_spec, w_spec, b_spec],
                out_specs=o_spec,
                scratch_shapes=[pltpu.VMEM((tm, tn), jnp.float32)]),
            compiler_params=cparams,
        )(xp, wp, bp)
    else:
        rp = residual.astype(jnp.bfloat16)
        if (mp, npd) != (m, n):
            rp = jnp.pad(rp, ((0, mp - m), (0, npd - n)))
        r_spec = pl.BlockSpec((tm, tn), lambda i, j, kk: (i, j))  # ignores K
        out = pl.pallas_call(
            functools.partial(_mm_bias_res_kernel, relu=relu),
            out_shape=jax.ShapeDtypeStruct((mp, npd), out_dtype),
            grid_spec=pltpu.PrefetchScalarGridSpec(
                num_scalar_prefetch=0, grid=grid,
                in_specs=[x_spec, w_spec, b_spec, r_spec],
                out_specs=o_spec,
                scratch_shapes=[pltpu.VMEM((tm, tn), jnp.float32)]),
            compiler_params=cparams,
        )(xp, wp, bp, rp)

    if (mp, npd) != (m, n):
        out = out[:m, :n]
    return out


# ----------------------------- conv helpers --------------------------------

def _extract_patches(x, kh, kw, stride, ph, pw):
    """x: (N,H,W,C) bf16 -> (N,Ho,Wo, kh*kw*C) patches (flatten order kh,kw,C)."""
    n, h, w, c = x.shape
    xp = jnp.pad(x, ((0, 0), (ph, ph), (pw, pw), (0, 0)))
    ho = (h + 2 * ph - kh) // stride + 1
    wo = (w + 2 * pw - kw) // stride + 1
    cols = []
    for di in range(kh):
        for dj in range(kw):
            cols.append(
                xp[:, di:di + (ho - 1) * stride + 1:stride,
                      dj:dj + (wo - 1) * stride + 1:stride, :])
    return jnp.concatenate(cols, axis=-1), ho, wo


def conv_bn_act(x, wb, stride=1, relu=False, residual=None):
    """x: (N,H,W,Cin) bf16. wb = (scale-folded weight (kh,kw,Cin,Cout) bf16, bias (1,Cout) f32)."""
    w, bias = wb
    kh, kw, cin, cout = w.shape
    n = x.shape[0]
    if kh == 1 and kw == 1:
        xs = x if stride == 1 else x[:, ::stride, ::stride, :]
        ho, wo = xs.shape[1], xs.shape[2]
        x2d = xs.reshape(n * ho * wo, cin)
    else:
        # TODO(synk): fuse patch extraction into the GEMM (implicit im2col).
        patches, ho, wo = _extract_patches(x, kh, kw, stride, kh // 2, kw // 2)
        x2d = patches.reshape(n * ho * wo, kh * kw * cin)
    w2d = w.reshape(kh * kw * cin, cout)
    r2d = None if residual is None else residual.reshape(n * ho * wo, cout)
    out2d = matmul_bias_act(x2d, w2d, bias, relu=relu, residual=r2d)
    return out2d.reshape(n, ho, wo, cout)


def maxpool_3x3_s2_p1(x):
    # Left to XLA as a fused strided-slice max tree (per perf review: a Pallas
    # call here only adds a 9x HBM-stacked tap tensor before a trivial max).
    n, h, w, c = x.shape
    neg = float(jnp.finfo(x.dtype).min)
    xp = jnp.pad(x, ((0, 0), (1, 1), (1, 1), (0, 0)), constant_values=neg)
    ho = (h + 2 - 3) // 2 + 1
    wo = (w + 2 - 3) // 2 + 1
    out = None
    for di in range(3):
        for dj in range(3):
            tap = xp[:, di:di + (ho - 1) * 2 + 1:2,
                        dj:dj + (wo - 1) * 2 + 1:2, :]
            out = tap if out is None else jnp.maximum(out, tap)
    return out


# ----------------------------- parameters ----------------------------------

def _make_conv_bn(key, kh, kw, cin, cout):
    k1, k2, k3, k4, k5 = jax.random.split(key, 5)
    w = jax.random.normal(k1, (kh, kw, cin, cout), jnp.float32) * np.sqrt(
        2.0 / (kh * kw * cin))
    gamma = 1.0 + 0.1 * jax.random.normal(k2, (cout,), jnp.float32)
    beta = 0.1 * jax.random.normal(k3, (cout,), jnp.float32)
    mean = 0.1 * jax.random.normal(k4, (cout,), jnp.float32)
    var = 1.0 + 0.1 * jax.random.uniform(k5, (cout,), jnp.float32)
    scale = gamma / jnp.sqrt(var + _EPS)
    bias = beta - mean * scale
    # Fold the inference BN scale into the conv weight; epilogue is +bias only.
    w_folded = (w * scale[None, None, None, :]).astype(jnp.bfloat16)
    return (w_folded, bias.reshape(1, cout).astype(jnp.float32))


def build_params(key):
    keys = list(jax.random.split(key, 64))
    it = iter(keys)
    params = {"stem": _make_conv_bn(next(it), 7, 7, 3, 64), "layers": []}
    # Matches ResNet50.__init__: layer2..5, each with n = deepths[0] = 3 blocks.
    layer_defs = [(64, 64), (256, 128), (512, 256), (1024, 512)]
    n_blocks = 3
    for in_c, out_c in layer_defs:
        downsampling = 2 if in_c != out_c else 1
        blocks = []
        block_in = in_c
        for bi in range(n_blocks):
            ds = downsampling if bi == 0 else 1
            exp = out_c * 4
            blk = {
                "conv1": _make_conv_bn(next(it), 1, 1, block_in, out_c),
                "conv2": _make_conv_bn(next(it), 3, 3, out_c, out_c),
                "conv3": _make_conv_bn(next(it), 1, 1, out_c, exp),
                "ds": ds,
            }
            if block_in != exp:  # should_apply_shortcut
                blk["shortcut"] = _make_conv_bn(next(it), 1, 1, block_in, exp)
            blocks.append(blk)
            block_in = exp
        params["layers"].append(blocks)
    return params


# ----------------------------- forward pass --------------------------------

def bottleneck_block(x, blk):
    ds = blk["ds"]
    if "shortcut" in blk:
        residual = conv_bn_act(x, blk["shortcut"], stride=ds, relu=False)
    else:
        residual = x
    y = conv_bn_act(x, blk["conv1"], stride=1, relu=True)
    y = conv_bn_act(y, blk["conv2"], stride=ds, relu=True)
    # conv3 + BN + residual add; no activation after the add (as in the module).
    y = conv_bn_act(y, blk["conv3"], stride=1, relu=False, residual=residual)
    return y


def resnet50_forward(x_nchw, params, encode=True):
    x = jnp.transpose(x_nchw.astype(jnp.float32), (0, 2, 3, 1))  # NCHW -> NHWC
    x = x.astype(jnp.bfloat16)
    # layer1: conv7x7 s2 p3 + BN + ReLU + maxpool3x3 s2 p1
    y = conv_bn_act(x, params["stem"], stride=2, relu=True)
    l1 = maxpool_3x3_s2_p1(y)
    feats = [l1]
    y = l1
    for blocks in params["layers"]:
        for blk in blocks:
            y = bottleneck_block(y, blk)
        feats.append(y)
    # back to NCHW / f32 to match the PyTorch module's output convention
    feats_nchw = [jnp.transpose(f.astype(jnp.float32), (0, 3, 1, 2))
                  for f in feats]
    l5 = feats_nchw[-1]
    if encode:
        return l5, feats_nchw
    return l5


# ----------------------------- main -----------------------------------------

if __name__ == "__main__":
    key = jax.random.PRNGKey(0)
    kx, kp, km = jax.random.split(key, 3)

    # Quick correctness check of the fused GEMM primitive (exercises padding).
    xt = jax.random.normal(km, (160, 300), jnp.float32)
    wt = jax.random.normal(jax.random.fold_in(km, 1), (300, 200), jnp.float32)
    bt = jax.random.normal(jax.random.fold_in(km, 2), (1, 200), jnp.float32)
    got = matmul_bias_act(xt, wt, bt, relu=True).astype(jnp.float32)
    ref = jnp.maximum(
        xt.astype(jnp.bfloat16).astype(jnp.float32)
        @ wt.astype(jnp.bfloat16).astype(jnp.float32) + bt, 0.0)
    rel_err = jnp.max(jnp.abs(got - ref)) / (jnp.max(jnp.abs(ref)) + 1e-6)
    assert float(rel_err) < 2e-2, float(rel_err)

    x = jax.random.normal(kx, (2, 3, 32, 32), jnp.float32)  # NCHW input
    params = build_params(kp)

    fwd = jax.jit(lambda inp: resnet50_forward(inp, params, encode=True))
    l5, feats = fwd(x)
    jax.block_until_ready(l5)
    for f in feats:
        jax.block_until_ready(f)

    expected = [(2, 64, 8, 8), (2, 256, 8, 8), (2, 512, 4, 4),
                (2, 1024, 2, 2), (2, 2048, 1, 1)]
    assert [tuple(f.shape) for f in feats] == expected, \
        [tuple(f.shape) for f in feats]
    assert tuple(l5.shape) == (2, 2048, 1, 1)
    assert bool(jnp.all(jnp.isfinite(l5)))
    print("KERNEL_OK")
</pallas_src>

<mosaic_0001>
module attributes {stable_mosaic.version = 11 : i64} {
  func.func @_mm_bias_kernel(%arg0: i32, %arg1: i32, %arg2: i32, %arg3: memref<160x384xbf16, #tpu.memory_space<vmem>>, %arg4: memref<384x256xbf16, #tpu.memory_space<vmem>>, %arg5: memref<1x256xf32, #tpu.memory_space<vmem>>, %arg6: memref<160x256xbf16, #tpu.memory_space<vmem>>, %arg7: memref<160x256xf32, #tpu.memory_space<vmem>>) attributes {dimension_semantics = [#tpu.dimension_semantics<parallel>, #tpu.dimension_semantics<parallel>, #tpu.dimension_semantics<arbitrary>], iteration_bounds = array<i64: 1, 1, 1>, scalar_prefetch = 0 : i64, scratch_operands = 1 : i64, tpu.core_type = #tpu.core_type<tc>, window_params = [{transform_indices = @transform_0, window_bounds = array<i64: 160, 384>}, {transform_indices = @transform_1, window_bounds = array<i64: 384, 256>}, {transform_indices = @transform_2, window_bounds = array<i64: 1, 256>}, {transform_indices = @transform_3, window_bounds = array<i64: 160, 256>}]} {
    %c0_i32 = arith.constant 0 : i32
    %0 = arith.cmpi eq, %arg2, %c0_i32 : i32
    %1 = arith.extui %0 : i1 to i32
    %c0_i32_0 = arith.constant 0 : i32
    %2 = arith.cmpi ne, %1, %c0_i32_0 : i32
    scf.if %2 {
      %cst_10 = arith.constant 0.000000e+00 : f32
      %12 = vector.broadcast %cst_10 : f32 to vector<160x256xf32>
      %c0_11 = arith.constant 0 : index
      %c0_12 = arith.constant 0 : index
      %13 = vector.load %arg7[%c0_11, %c0_12] : memref<160x256xf32, #tpu.memory_space<vmem>>, vector<160x256xf32>
      tpu.vector_store %arg7[%c0_11, %c0_12], %12 {strides = array<i32>} : memref<160x256xf32, #tpu.memory_space<vmem>>, vector<160x256xf32>,
    } else {
    }
    %c0 = arith.constant 0 : index
    %c0_1 = arith.constant 0 : index
    %3 = vector.load %arg7[%c0, %c0_1] : memref<160x256xf32, #tpu.memory_space<vmem>>, vector<160x256xf32>
    %c0_2 = arith.constant 0 : index
    %c0_3 = arith.constant 0 : index
    %4 = vector.load %arg3[%c0_2, %c0_3] : memref<160x384xbf16, #tpu.memory_space<vmem>>, vector<160x384xbf16>
    %c0_4 = arith.constant 0 : index
    %c0_5 = arith.constant 0 : index
    %5 = vector.load %arg4[%c0_4, %c0_5] : memref<384x256xbf16, #tpu.memory_space<vmem>>, vector<384x256xbf16>
    %cst = arith.constant dense<0.000000e+00> : vector<160x256xf32>
    %6 = tpu.matmul %4, %5, %cst {dimension_numbers = #tpu.dot_dimension_numbers<[1], [0], [0], [1], [0, 0, 1, 1], [], []>} : vector<160x384xbf16>, vector<384x256xbf16>, vector<160x256xf32> -> vector<160x256xf32>
    %7 = arith.addf %3, %6 : vector<160x256xf32>
    %c0_6 = arith.constant 0 : index
    %c0_7 = arith.constant 0 : index
    %8 = vector.load %arg7[%c0_6, %c0_7] : memref<160x256xf32, #tpu.memory_space<vmem>>, vector<160x256xf32>
    tpu.vector_store %arg7[%c0_6, %c0_7], %7 {strides = array<i32>} : memref<160x256xf32, #tpu.memory_space<vmem>>, vector<160x256xf32>,
    %c0_i32_8 = arith.constant 0 : i32
    %9 = arith.cmpi eq, %arg2, %c0_i32_8 : i32
    %10 = arith.extui %9 : i1 to i32
    %c0_i32_9 = arith.constant 0 : i32
    %11 = arith.cmpi ne, %10, %c0_i32_9 : i32
    scf.if %11 {
      %c0_10 = arith.constant 0 : index
      %c0_11 = arith.constant 0 : index
      %12 = vector.load %arg7[%c0_10, %c0_11] : memref<160x256xf32, #tpu.memory_space<vmem>>, vector<160x256xf32>
      %c0_12 = arith.constant 0 : index
      %c0_13 = arith.constant 0 : index
      %13 = vector.load %arg5[%c0_12, %c0_13] : memref<1x256xf32, #tpu.memory_space<vmem>>, vector<1x256xf32>
      %14 = vector.broadcast %13 : vector<1x256xf32> to vector<160x256xf32>
      %15 = arith.addf %12, %14 : vector<160x256xf32>
      %cst_14 = arith.constant 0.000000e+00 : f32
      %16 = vector.broadcast %cst_14 : f32 to vector<160x256xf32>
      %17 = arith.maximumf %15, %16 : vector<160x256xf32>
      %18 = arith.truncf %17 : vector<160x256xf32> to vector<160x256xbf16>
      %c0_15 = arith.constant 0 : index
      %c0_16 = arith.constant 0 : index
      %19 = vector.load %arg6[%c0_15, %c0_16] : memref<160x256xbf16, #tpu.memory_space<vmem>>, vector<160x256xbf16>
      tpu.vector_store %arg6[%c0_15, %c0_16], %18 {strides = array<i32>} : memref<160x256xbf16, #tpu.memory_space<vmem>>, vector<160x256xbf16>,
    } else {
    }
    return
  }
  func.func @transform_0(%arg0: i32, %arg1: i32, %arg2: i32) -> (i32, i32) {
    %c0_i32 = arith.constant 0 : i32
    return %arg0, %arg2 : i32, i32
  }
  func.func @transform_1(%arg0: i32, %arg1: i32, %arg2: i32) -> (i32, i32) {
    %c0_i32 = arith.constant 0 : i32
    return %arg2, %arg1 : i32, i32
  }
  func.func @transform_2(%arg0: i32, %arg1: i32, %arg2: i32) -> (i32, i32) {
    %c0_i32 = arith.constant 0 : i32
    %c0_i32_0 = arith.constant 0 : i32
    return %c0_i32, %arg1 : i32, i32
  }
  func.func @transform_3(%arg0: i32, %arg1: i32, %arg2: i32) -> (i32, i32) {
    %c0_i32 = arith.constant 0 : i32
    return %arg0, %arg1 : i32, i32
  }
}

</mosaic_0001>

<bundles_post_ra>
// kernel: tpu_custom_call.1
= control target key start
LH: loop header
LB: loop body
LE: loop exit
PB: predicated region body
PF: predicated region fallthrough
CT: control target
= control target key end

     0   :  { %8 = vsyncpa [#allocation4], 0  ;;  %s1789_s0 = inlined_call_operand.hbm [shape: bf16[160,384], index: 0, kind: input, shape index: {}]   ;;  %s1790_s1 = inlined_call_operand.hbm [shape: bf16[384,256], index: 1, kind: input, shape index: {}]   ;;  %s1791_s2 = inlined_call_operand.vmem [shape: f32[1,256], index: 2, kind: input, shape index: {}]   ;;  %s1792_s3 = inlined_call_operand.hbm [shape: bf16[160,256], index: 3, kind: output, shape index: {}]  }
   0x1   :  { %9 = vsyncpa [#allocation7], 0 }
   0x2   :  { %10 = vsyncpa [#allocation5], 0  ;;  %s1605_s12 = smov [#allocation3]   ;;  %s1533_s16 = scalar_lea.hbm %s1789_s0, 3840 }
   0x3   :  { %s16_s13 = sshll.u32 %s1605_s12, 4  ;;  %p1534_p0 = scmp.ne.s32.totalorder %s1789_s0, %s1533_s16  ;;  %s17_s13 = int_to_ptr.vmem [resolvable:$true] %s16_s13 }
   0x4   :  { %p1537_p1 = scmp.lt.u32.totalorder %s1533_s16, %s1789_s0 }
   0x6   :  { %p1539_p2 = pnand %p1537_p1, %p1534_p0 }
   0x8   :  { %1542 = shalt.err (!%p1539_p2)
}
   0x9   :  { %s1543_s21 = scalar_lea.vmem %s17_s13, 3840  ;;  %p1548_p4 = scmp.lt.s32.totalorder %s17_s13, %s17_s13 }
   0xa   :  { %p1544_p3 = scmp.ne.s32.totalorder %s17_s13, %s1543_s21  ;;  %p1549_p5 = scmp.lt.s32.totalorder %s1543_s21, %s1543_s21 }
   0xc   :  { %p1550_p6 = por %p1549_p5, %p1548_p4 }
   0xe   :  { %p1551_p7 = pnand %p1550_p6, %p1544_p3 }
  0x10   :  { %1554 = shalt.err (!%p1551_p7)
}
  0x11   :  { %s1606_s22 = smov 192   ;;  %s1607_s23 = smov 12  }
  0x12   :  { %22 = dma.hbm_to_vmem [thread:$0]  %s1789_s0, 3840, %s17_s13, [#allocation4], %s1606_s22, %s1606_s22, %s1607_s23  }
  0x13   :  { %s1608_s26 = smov [#allocation6]   ;;  %s1555_s30 = scalar_lea.hbm %s1790_s1, 6144 }
  0x14   :  { %s28_s27 = sshll.u32 %s1608_s26, 4  ;;  %p1556_p8 = scmp.ne.s32.totalorder %s1790_s1, %s1555_s30  ;;  %s29_s27 = int_to_ptr.vmem [resolvable:$true] %s28_s27 }
  0x15   :  { %p1559_p9 = scmp.lt.u32.totalorder %s1555_s30, %s1790_s1 }
  0x17   :  { %p1561_p10 = pnand %p1559_p9, %p1556_p8 }
  0x19   :  { %1564 = shalt.err (!%p1561_p10)
}
  0x1a   :  { %s1565_s8 = scalar_lea.vmem %s29_s27, 6144  ;;  %p1570_p12 = scmp.lt.s32.totalorder %s29_s27, %s29_s27 }
  0x1b   :  { %p1566_p11 = scmp.ne.s32.totalorder %s29_s27, %s1565_s8  ;;  %p1571_p13 = scmp.lt.s32.totalorder %s1565_s8, %s1565_s8 }
  0x1d   :  { %p1572_p0 = por %p1571_p13, %p1570_p12 }
  0x1f   :  { %p1573_p1 = pnand %p1572_p0, %p1566_p11 }
  0x21   :  { %1576 = shalt.err (!%p1573_p1)
}
  0x22   :  { %s1609_s0 = smov 128   ;;  %s1610_s9 = smov 8  }
  0x23   :  { %34 = dma.hbm_to_vmem [thread:$0]  %s1790_s1, 6144, %s29_s27, [#allocation7], %s1609_s0, %s1609_s0, %s1610_s9  }
  0x24   :  { %1599 = dma.done.wait [#allocation4], 3840  }
  0x25   :  { %1600 = vsyncadd [#allocation4], 4294963456 }
  0x26   :  { %1601 = dma.done.wait [#allocation7], 6144  }
  0x27   :  { %1602 = vsyncadd [#allocation7], 4294961152  ;;  %v1611_v0 = vmov 0   ;;  %v1421_v1 = vld [vmem:[#allocation6 + $0x4] ss:$8 sps:$4 sm:$0xff]  }
  0x28   :  { %781 = vmatprep.mubr.bf16.mxu0 %v1611_v0  ;;  %v1423_v2 = vld [vmem:[#allocation6] ss:$8 sps:$4 sm:$0xff]   ;;  %616 = vmatprep.subr.bf16.mxu1 %v1421_v1  ;;  %v1424_v3 = vld [vmem:[#allocation6 + $0x14] ss:$8 sps:$4 sm:$0xff]   ;;  %v1426_v4 = vld [vmem:[#allocation6 + $0x10] ss:$8 sps:$4 sm:$0xff]  }
  0x29   :  { %617 = vmatpush1.bf16.msra.mxu1 %v1423_v2  ;;  %v1427_v5 = vld [vmem:[#allocation6 + $0x24] ss:$8 sps:$4 sm:$0xff]   ;;  %v1429_v6 = vld [vmem:[#allocation6 + $0x20] ss:$8 sps:$4 sm:$0xff]   ;;  %v1430_v7 = vld [vmem:[#allocation6 + $0x34] ss:$8 sps:$4 sm:$0xff]  }
  0x2a   :  { %618 = vmatprep.subr.bf16.mxu1 %v1424_v3  ;;  %v1432_v8 = vld [vmem:[#allocation6 + $0x30] ss:$8 sps:$4 sm:$0xff]   ;;  %v1445_v9 = vld [vmem:[#allocation6 + $0x104] ss:$8 sps:$4 sm:$0xff]   ;;  %v1447_v10 = vld [vmem:[#allocation6 + $0x100] ss:$8 sps:$4 sm:$0xff]  }
  0x2b   :  { %v1433_v11 = vld [vmem:[#allocation6 + $0x44] ss:$8 sps:$4 sm:$0xff]   ;;  %749 = vmatprep.subr.bf16.mxu0 %v1445_v9  ;;  %v1451_v12 = vld [vmem:[#allocation6 + $0x114] ss:$8 sps:$4 sm:$0xff]   ;;  %v1453_v13 = vld [vmem:[#allocation6 + $0x110] ss:$8 sps:$4 sm:$0xff]  }
  0x2c   :  { %750 = vmatpush1.bf16.msra.mxu0 %v1447_v10  ;;  %v1435_v14 = vld [vmem:[#allocation6 + $0x40] ss:$8 sps:$4 sm:$0xff]   ;;  %v1436_v15 = vld [vmem:[#allocation6 + $0x54] ss:$8 sps:$4 sm:$0xff]   ;;  %v1457_v16 = vld [vmem:[#allocation6 + $0x124] ss:$8 sps:$4 sm:$0xff]  }
  0x2d   :  { %619 = vmatpush1.bf16.msra.mxu1 %v1426_v4  ;;  %751 = vmatprep.subr.bf16.mxu0 %v1451_v12  ;;  %v1459_v17 = vld [vmem:[#allocation6 + $0x120] ss:$8 sps:$4 sm:$0xff]   ;;  %v1438_v18 = vld [vmem:[#allocation6 + $0x50] ss:$8 sps:$4 sm:$0xff]   ;;  %v1463_v19 = vld [vmem:[#allocation6 + $0x134] ss:$8 sps:$4 sm:$0xff]  }
  0x2e   :  { %620 = vmatprep.subr.bf16.mxu1 %v1427_v5  ;;  %v1439_v20 = vld [vmem:[#allocation6 + $0x64] ss:$8 sps:$4 sm:$0xff]   ;;  %v1465_v21 = vld [vmem:[#allocation6 + $0x130] ss:$8 sps:$4 sm:$0xff]   ;;  %v1441_v22 = vld [vmem:[#allocation6 + $0x60] ss:$8 sps:$4 sm:$0xff]  }
  0x2f   :  { %v1469_v23 = vld [vmem:[#allocation6 + $0x144] ss:$8 sps:$4 sm:$0xff]   ;;  %v1442_v24 = vld [vmem:[#allocation6 + $0x74] ss:$8 sps:$4 sm:$0xff]   ;;  %v1471_v25 = vld [vmem:[#allocation6 + $0x140] ss:$8 sps:$4 sm:$0xff]  }
  0x30   :  { %752 = vmatpush1.bf16.msra.mxu0 %v1453_v13  ;;  %v1444_v26 = vld [vmem:[#allocation6 + $0x70] ss:$8 sps:$4 sm:$0xff]   ;;  %v1475_v27 = vld [vmem:[#allocation6 + $0x154] ss:$8 sps:$4 sm:$0xff]   ;;  %v1448_v28 = vld [vmem:[#allocation6 + $0x84] ss:$8 sps:$4 sm:$0xff]  }
  0x31   :  { %621 = vmatpush1.bf16.msra.mxu1 %v1429_v6  ;;  %753 = vmatprep.subr.bf16.mxu0 %v1457_v16  ;;  %v1477_v29 = vld [vmem:[#allocation6 + $0x150] ss:$8 sps:$4 sm:$0xff]   ;;  %v1450_v30 = vld [vmem:[#allocation6 + $0x80] ss:$8 sps:$4 sm:$0xff]   ;;  %v1481_v31 = vld [vmem:[#allocation6 + $0x164] ss:$8 sps:$4 sm:$0xff]  }
  0x32   :  { %622 = vmatprep.subr.bf16.mxu1 %v1430_v7  ;;  %v1454_v32 = vld [vmem:[#allocation6 + $0x94] ss:$8 sps:$4 sm:$0xff]   ;;  %v1456_v33 = vld [vmem:[#allocation6 + $0x90] ss:$8 sps:$4 sm:$0xff]   ;;  %v1483_v34 = vld [vmem:[#allocation6 + $0x160] ss:$8 sps:$4 sm:$0xff]  }
  0x33   :  { %v1496_v35 = vld [vmem:[#allocation3 + $0x4] ss:$12 sps:$4 sm:$0xff]   ;;  %v1460_v37 = vld [vmem:[#allocation6 + $0xa4] ss:$8 sps:$4 sm:$0xff]   ;;  %v1489_v38 = vld [vmem:[#allocation6 + $0x170] ss:$8 sps:$4 sm:$0xff]  }
  0x34   :  { %754 = vmatpush1.bf16.msra.mxu0 %v1459_v17  ;;  %v1487_v36 = vld [vmem:[#allocation6 + $0x174] ss:$8 sps:$4 sm:$0xff]   ;;  %648 = vmatprep.mubr.bf16.mxu1 %v1496_v35  ;;  %v1462_v39 = vld [vmem:[#allocation6 + $0xa0] ss:$8 sps:$4 sm:$0xff]   ;;  %v1493_v41 = vld [vmem:[#allocation3 + $0x8] ss:$12 sps:$4 sm:$0xff]  }
  0x35   :  { %623 = vmatpush1.bf16.msra.mxu1 %v1432_v8  ;;  %755 = vmatprep.subr.bf16.mxu0 %v1463_v19  ;;  %v1466_v40 = vld [vmem:[#allocation6 + $0xb4] ss:$8 sps:$4 sm:$0xff]   ;;  %v1468_v42 = vld [vmem:[#allocation6 + $0xb0] ss:$8 sps:$4 sm:$0xff]   ;;  %v1472_v43 = vld [vmem:[#allocation6 + $0xc4] ss:$8 sps:$4 sm:$0xff]  }
  0x36   :  { %624 = vmatprep.subr.bf16.mxu1 %v1433_v11  ;;  %v1474_v44 = vld [vmem:[#allocation6 + $0xc0] ss:$8 sps:$4 sm:$0xff]   ;;  %v1478_v45 = vld [vmem:[#allocation6 + $0xd4] ss:$8 sps:$4 sm:$0xff]   ;;  %v1480_v47 = vld [vmem:[#allocation6 + $0xd0] ss:$8 sps:$4 sm:$0xff]  }
  0x37   :  { %v1497_v46 = vld [vmem:[#allocation3 + $0x20] ss:$12 sps:$4 sm:$0xff]   ;;  %v1484_v48 = vld [vmem:[#allocation6 + $0xe4] ss:$8 sps:$4 sm:$0xff]   ;;  %v1486_v49 = vld [vmem:[#allocation6 + $0xe0] ss:$8 sps:$4 sm:$0xff]  }
  0x38   :  { %756 = vmatpush1.bf16.msra.mxu0 %v1465_v21  ;;  %v1490_v50 = vld [vmem:[#allocation6 + $0xf4] ss:$8 sps:$4 sm:$0xff]   ;;  %v1492_v52 = vld [vmem:[#allocation6 + $0xf0] ss:$8 sps:$4 sm:$0xff]   ;;  %v1505_v55 = vld [vmem:[#allocation3 + $0x50] ss:$12 sps:$4 sm:$0xff]  }
  0x39   :  { %625 = vmatpush1.bf16.msra.mxu1 %v1435_v14  ;;  %757 = vmatprep.subr.bf16.mxu0 %v1469_v23  ;;  %v1501_v51 = vld [vmem:[#allocation3 + $0x38] ss:$12 sps:$4 sm:$0xff]   ;;  %v1494_v53 = vld [vmem:[#allocation3] ss:$12 sps:$4 sm:$0xff]   ;;  %v1498_v54 = vld [vmem:[#allocation3 + $0x1c] ss:$12 sps:$4 sm:$0xff]  }
  0x3a   :  { %626 = vmatprep.subr.bf16.mxu1 %v1436_v15  ;;  %v1500_v56 = vld [vmem:[#allocation3 + $0x18] ss:$12 sps:$4 sm:$0xff]   ;;  %v1502_v57 = vld [vmem:[#allocation3 + $0x34] ss:$12 sps:$4 sm:$0xff]   ;;  %v1504_v59 = vld [vmem:[#allocation3 + $0x30] ss:$12 sps:$4 sm:$0xff]  }
  0x3b   :  { %v1509_v58 = vld [vmem:[#allocation3 + $0x68] ss:$12 sps:$4 sm:$0xff]   ;;  %v1506_v60 = vld [vmem:[#allocation3 + $0x4c] ss:$12 sps:$4 sm:$0xff]   ;;  %v1510_v63 = vld [vmem:[#allocation3 + $0x64] ss:$12 sps:$4 sm:$0xff]  }
  0x3c   :  { %758 = vmatpush1.bf16.msra.mxu0 %v1471_v25  ;;  %v1513_v61 = vld [vmem:[#allocation3 + $0x80] ss:$12 sps:$4 sm:$0xff]   ;;  %v1508_v62 = vld [vmem:[#allocation3 + $0x48] ss:$12 sps:$4 sm:$0xff]   ;;  %v1517_v1 = vld [vmem:[#allocation3 + $0x98] ss:$12 sps:$4 sm:$0xff]  }
  0x3d   :  { %627 = vmatpush1.bf16.msra.mxu1 %v1438_v18  ;;  %759 = vmatprep.subr.bf16.mxu0 %v1475_v27  ;;  %v1512_v2 = vld [vmem:[#allocation3 + $0x60] ss:$12 sps:$4 sm:$0xff]   ;;  %v1514_v3 = vld [vmem:[#allocation3 + $0x7c] ss:$12 sps:$4 sm:$0xff]   ;;  %v1516_v5 = vld [vmem:[#allocation3 + $0x78] ss:$12 sps:$4 sm:$0xff]  }
  0x3e   :  { %628 = vmatprep.subr.bf16.mxu1 %v1439_v20  ;;  %v1521_v4 = vld [vmem:[#allocation3 + $0xb0] ss:$12 sps:$4 sm:$0xff]   ;;  %v1518_v6 = vld [vmem:[#allocation3 + $0x94] ss:$12 sps:$4 sm:$0xff]   ;;  %v1522_v9 = vld [vmem:[#allocation3 + $0xac] ss:$12 sps:$4 sm:$0xff]  }
  0x3f   :  { %v1525_v7 = vld [vmem:[#allocation3 + $0xc8] ss:$12 sps:$4 sm:$0xff]   ;;  %v1520_v8 = vld [vmem:[#allocation3 + $0x90] ss:$12 sps:$4 sm:$0xff]   ;;  %v1529_v10 = vld [vmem:[#allocation3 + $0xe0] ss:$12 sps:$4 sm:$0xff]  }
  0x40   :  { %760 = vmatpush1.bf16.msra.mxu0 %v1477_v29  ;;  %v1524_v11 = vld [vmem:[#allocation3 + $0xa8] ss:$12 sps:$4 sm:$0xff]   ;;  %v1526_v12 = vld [vmem:[#allocation3 + $0xc4] ss:$12 sps:$4 sm:$0xff]   ;;  %v1528_v13 = vld [vmem:[#allocation3 + $0xc0] ss:$12 sps:$4 sm:$0xff]  }
  0x41   :  { %629 = vmatpush1.bf16.msra.mxu1 %v1441_v22  ;;  %761 = vmatprep.subr.bf16.mxu0 %v1481_v31  ;;  %v1530_v14 = vld [vmem:[#allocation3 + $0xdc] ss:$12 sps:$4 sm:$0xff]   ;;  %v1532_v15 = vld [vmem:[#allocation3 + $0xd8] ss:$12 sps:$4 sm:$0xff]   ;;  %v1005_v27 = vld [vmem:[%s1791_s2] sm:$0x3] }
  0x42   :  { %630 = vmatprep.subr.bf16.mxu1 %v1442_v24  ;;  %s1612_s2 = smov [#allocation8]  }
  0x43   :  { %s1242_s13 = sshll.u32 %s1612_s2, 4  ;;  %s1243_s13 = int_to_ptr.vmem [resolvable:$true] %s1242_s13 }
  0x44   :  { %762 = vmatpush1.bf16.msra.mxu0 %v1483_v34  ;;  %s1577_s14 = scalar_lea.vmem %s1243_s13, 2560  ;;  %p1582_p3 = scmp.lt.s32.totalorder %s1243_s13, %s1243_s13 }
  0x45   :  { %631 = vmatpush1.bf16.msra.mxu1 %v1444_v26  ;;  %763 = vmatprep.subr.bf16.mxu0 %v1487_v36  ;;  %p1578_p2 = scmp.ne.s32.totalorder %s1243_s13, %s1577_s14  ;;  %p1583_p4 = scmp.lt.s32.totalorder %s1577_s14, %s1577_s14 }
  0x46   :  { %632 = vmatprep.subr.bf16.mxu1 %v1448_v28 }
  0x47   :  { %p1584_p5 = por %p1583_p4, %p1582_p3 }
  0x48   :  { %764 = vmatpush1.bf16.msra.mxu0 %v1489_v38 }
  0x49   :  { %633 = vmatpush1.bf16.msra.mxu1 %v1450_v30  ;;  %p1585_p6 = pnand %p1584_p5, %p1578_p2 }
  0x4a   :  { %634 = vmatprep.subr.bf16.mxu1 %v1454_v32 }
  0x4b   :  { %782 = vmatmul.mubr.bf16.vlgmr.msra.gmra.mrb[0].mxu0 %v1493_v41 }
  0x4c   :  { %791 = vmatprep.mubr.bf16.mxu0 %v1611_v0 }
  0x4d   :  { %635 = vmatpush1.bf16.msra.mxu1 %v1456_v33 }
  0x4e   :  { %636 = vmatprep.subr.bf16.mxu1 %v1460_v37 }
  0x51   :  { %637 = vmatpush1.bf16.msra.mxu1 %v1462_v39 }
  0x52   :  { %638 = vmatprep.subr.bf16.mxu1 %v1466_v40 }
  0x53   :  { %792 = vmatmul.mubr.bf16.gmra.mrb[4].mxu0 %v1497_v46 }
  0x54   :  { %801 = vmatprep.mubr.bf16.mxu0 %v1611_v0 }
  0x55   :  { %639 = vmatpush1.bf16.msra.mxu1 %v1468_v42 }
  0x56   :  { %640 = vmatprep.subr.bf16.mxu1 %v1472_v43 }
  0x59   :  { %641 = vmatpush1.bf16.msra.mxu1 %v1474_v44 }
  0x5a   :  { %642 = vmatprep.subr.bf16.mxu1 %v1478_v45 }
  0x5b   :  { %802 = vmatmul.mubr.bf16.gmra.mrb[8].mxu0 %v1501_v51 }
  0x5c   :  { %811 = vmatprep.mubr.bf16.mxu0 %v1611_v0 }
  0x5d   :  { %643 = vmatpush1.bf16.msra.mxu1 %v1480_v47 }
  0x5e   :  { %644 = vmatprep.subr.bf16.mxu1 %v1484_v48 }
  0x61   :  { %645 = vmatpush1.bf16.msra.mxu1 %v1486_v49 }
  0x62   :  { %646 = vmatprep.subr.bf16.mxu1 %v1490_v50 }
  0x63   :  { %812 = vmatmul.mubr.bf16.gmra.mrb[12].mxu0 %v1505_v55 }
  0x64   :  { %821 = vmatprep.mubr.bf16.mxu0 %v1611_v0 }
  0x65   :  { %647 = vmatpush1.bf16.msra.mxu1 %v1492_v52 }
  0x68   :  { %649 = vmatmul.mubr.bf16.vlgmr.msra.gmra.mrb[0].mxu1 %v1494_v53 }
  0x69   :  { %658 = vmatprep.mubr.bf16.mxu1 %v1498_v54 }
  0x6b   :  { %822 = vmatmul.mubr.bf16.gmra.mrb[16].mxu0 %v1509_v58 }
  0x6c   :  { %831 = vmatprep.mubr.bf16.mxu0 %v1611_v0 }
  0x70   :  { %659 = vmatmul.mubr.bf16.gmra.mrb[4].mxu1 %v1500_v56 }
  0x71   :  { %668 = vmatprep.mubr.bf16.mxu1 %v1502_v57 }
  0x73   :  { %832 = vmatmul.mubr.bf16.gmra.mrb[20].mxu0 %v1513_v61 }
  0x74   :  { %841 = vmatprep.mubr.bf16.mxu0 %v1611_v0 }
  0x78   :  { %669 = vmatmul.mubr.bf16.gmra.mrb[8].mxu1 %v1504_v59 }
  0x79   :  { %678 = vmatprep.mubr.bf16.mxu1 %v1506_v60 }
  0x7b   :  { %842 = vmatmul.mubr.bf16.gmra.mrb[24].mxu0 %v1517_v1 }
  0x7c   :  { %851 = vmatprep.mubr.bf16.mxu0 %v1611_v0 }
  0x80   :  { %679 = vmatmul.mubr.bf16.gmra.mrb[12].mxu1 %v1508_v62 }
  0x81   :  { %688 = vmatprep.mubr.bf16.mxu1 %v1510_v63 }
  0x83   :  { %852 = vmatmul.mubr.bf16.gmra.mrb[28].mxu0 %v1521_v4 }
  0x84   :  { %861 = vmatprep.mubr.bf16.mxu0 %v1611_v0 }
  0x88   :  { %689 = vmatmul.mubr.bf16.gmra.mrb[16].mxu1 %v1512_v2 }
  0x89   :  { %698 = vmatprep.mubr.bf16.mxu1 %v1514_v3 }
  0x8b   :  { %862 = vmatmul.mubr.bf16.gmra.mrb[32].mxu0 %v1525_v7 }
  0x8c   :  { %871 = vmatprep.mubr.bf16.mxu0 %v1611_v0  ;;  %v1007_v0 = vlaneseq }
  0x8e   :  { %v1008_v24 = vshrl.u32 %v1007_v0, 7 }
  0x90   :  { %699 = vmatmul.mubr.bf16.gmra.mrb[20].mxu1 %v1516_v5  ;;  %v1009_v25 = vsub.s32 0, %v1008_v24  ;;  %v1013_v28 = vsub.s32 1, %v1008_v24 }
  0x91   :  { %708 = vmatprep.mubr.bf16.mxu1 %v1518_v6 }
  0x92   :  { %v1673_v32 = vrot.slane %v1005_v27, %v1009_v25  ;;  %v1675_v34 = vrot.slane %v1005_v27, %v1013_v28 }
  0x93   :  { %872 = vmatmul.mubr.bf16.gmra.mrb[36].mxu0 %v1529_v10 }
  0x98   :  { %709 = vmatmul.mubr.bf16.gmra.mrb[24].mxu1 %v1520_v8 }
  0x99   :  { %718 = vmatprep.mubr.bf16.mxu1 %v1522_v9 }
  0xa0   :  { %719 = vmatmul.mubr.bf16.gmra.mrb[28].mxu1 %v1524_v11 }
  0xa1   :  { %728 = vmatprep.mubr.bf16.mxu1 %v1526_v12 }
  0xa8   :  { %729 = vmatmul.mubr.bf16.gmra.mrb[32].mxu1 %v1528_v13 }
  0xa9   :  { %738 = vmatprep.mubr.bf16.mxu1 %v1530_v14 }
  0xb0   :  { %739 = vmatmul.mubr.bf16.gmra.mrb[36].mxu1 %v1532_v15 }
 0x11e   :  { %v783_v16 = vpop.f32.mrb[0].mxu0 }
 0x11f   :  { %v785_v17 = vpop.f32.mrb[1].mxu0 }
 0x120   :  { %v787_v18 = vpop.f32.mrb[2].mxu0 }
 0x121   :  { %v789_v19 = vpop.f32.mrb[3].mxu0 }
 0x126   :  { %v793_v20 = vpop.f32.mrb[4].mxu0 }
 0x127   :  { %v795_v21 = vpop.f32.mrb[5].mxu0 }
 0x128   :  { %v797_v22 = vpop.f32.mrb[6].mxu0 }
 0x129   :  { %v799_v23 = vpop.f32.mrb[7].mxu0 }
 0x12e   :  { %v803_v26 = vpop.f32.mrb[8].mxu0 }
 0x12f   :  { %v805_v29 = vpop.f32.mrb[9].mxu0 }
 0x130   :  { %v807_v30 = vpop.f32.mrb[10].mxu0 }
 0x131   :  { %v809_v31 = vpop.f32.mrb[11].mxu0 }
 0x136   :  { %v813_v42 = vpop.f32.mrb[12].mxu0 }
 0x137   :  { %v1679_v45 = vpop.f32.mrb[13].mxu0 }
 0x138   :  { %v1682_v48 = vpop.f32.mrb[14].mxu0 }
 0x139   :  { %v1685_v51 = vpop.f32.mrb[15].mxu0 }
 0x13b   :  { %v650_v33 = vpop.f32.mrb[0].mxu1 }
 0x13c   :  { %v784_v35 = vadd.f32 %v783_v16, %v650_v33  ;;  %v652_v36 = vpop.f32.mrb[1].mxu1 }
 0x13d   :  { %v786_v37 = vadd.f32 %v785_v17, %v652_v36  ;;  %v654_v38 = vpop.f32.mrb[2].mxu1 }
 0x13e   :  { %v1017_v39 = vadd.f32 %v1673_v32, %v784_v35  ;;  %v788_v40 = vadd.f32 %v787_v18, %v654_v38  ;;  %v656_v41 = vpop.f32.mrb[3].mxu1  ;;  %v1688_v1 = vpop.f32.mrb[16].mxu0 }
 0x13f   :  { %v1018_v43 = vadd.f32 %v1675_v34, %v786_v37  ;;  %v790_v44 = vadd.f32 %v789_v19, %v656_v41  ;;  %v1691_v4 = vpop.f32.mrb[17].mxu0 }
 0x140   :  { %v1057_v46 = vmax.f32 %v1017_v39, 0.0  ;;  %v1019_v47 = vadd.f32 %v1673_v32, %v788_v40  ;;  %v1694_v7 = vpop.f32.mrb[18].mxu0 }
 0x141   :  { %v1058_v49 = vmax.f32 %v1018_v43, 0.0  ;;  %v1020_v50 = vadd.f32 %v1675_v34, %v790_v44  ;;  %v1697_v10 = vpop.f32.mrb[19].mxu0 }
 0x142   :  { %v1059_v52 = vmax.f32 %v1019_v47, 0.0 }
 0x143   :  { %v1353_v53 = vpack.c.bf16 %v1058_v49, %v1057_v46  ;;  %v1060_v54 = vmax.f32 %v1020_v50, 0.0  ;;  %v660_v55 = vpop.f32.mrb[4].mxu1 }
 0x144   :  { %v794_v56 = vadd.f32 %v793_v20, %v660_v55  ;;  %v662_v57 = vpop.f32.mrb[5].mxu1 }
 0x145   :  { %1217 = vst [vmem:[#allocation8] sm:$0xff] %v1353_v53  ;;  %v1354_v58 = vpack.c.bf16 %v1060_v54, %v1059_v52  ;;  %v796_v59 = vadd.f32 %v795_v21, %v662_v57  ;;  %v664_v60 = vpop.f32.mrb[6].mxu1 }
 0x146   :  { %v1021_v61 = vadd.f32 %v1673_v32, %v794_v56  ;;  %v798_v62 = vadd.f32 %v797_v22, %v664_v60  ;;  %v666_v63 = vpop.f32.mrb[7].mxu1  ;;  %v1700_v22 = vpop.f32.mrb[20].mxu0 }
 0x147   :  { %1218 = vst [vmem:[#allocation8 + $0x8] sm:$0xff] %v1354_v58  ;;  %v1022_v2 = vadd.f32 %v1675_v34, %v796_v59  ;;  %v800_v3 = vadd.f32 %v799_v23, %v666_v63  ;;  %v1703_v25 = vpop.f32.mrb[21].mxu0 }
 0x148   :  { %v1061_v5 = vmax.f32 %v1021_v61, 0.0  ;;  %v1023_v6 = vadd.f32 %v1673_v32, %v798_v62  ;;  %v1706_v28 = vpop.f32.mrb[22].mxu0 }
 0x149   :  { %v1062_v8 = vmax.f32 %v1022_v2, 0.0  ;;  %v1024_v9 = vadd.f32 %v1675_v34, %v800_v3  ;;  %v1709_v35 = vpop.f32.mrb[23].mxu0 }
 0x14a   :  { %v1063_v11 = vmax.f32 %v1023_v6, 0.0 }
 0x14b   :  { %v1355_v12 = vpack.c.bf16 %v1062_v8, %v1061_v5  ;;  %v1064_v13 = vmax.f32 %v1024_v9, 0.0  ;;  %v670_v14 = vpop.f32.mrb[8].mxu1 }
 0x14c   :  { %v804_v15 = vadd.f32 %v803_v26, %v670_v14  ;;  %v672_v16 = vpop.f32.mrb[9].mxu1 }
 0x14d   :  { %1219 = vst [vmem:[#allocation8 + $0x10] sm:$0xff] %v1355_v12  ;;  %v1356_v17 = vpack.c.bf16 %v1064_v13, %v1063_v11  ;;  %v806_v18 = vadd.f32 %v805_v29, %v672_v16  ;;  %v674_v19 = vpop.f32.mrb[10].mxu1 }
 0x14e   :  { %v1025_v0 = vadd.f32 %v1673_v32, %v804_v15  ;;  %v808_v20 = vadd.f32 %v807_v30, %v674_v19  ;;  %v676_v21 = vpop.f32.mrb[11].mxu1  ;;  %v1714_v49 = vpop.f32.mrb[24].mxu0 }
 0x14f   :  { %1220 = vst [vmem:[#allocation8 + $0x18] sm:$0xff] %v1356_v17  ;;  %v1026_v23 = vadd.f32 %v1675_v34, %v806_v18  ;;  %v810_v24 = vadd.f32 %v809_v31, %v676_v21  ;;  %v1718_v53 = vpop.f32.mrb[25].mxu0 }
 0x150   :  { %v1065_v27 = vmax.f32 %v1025_v0, 0.0  ;;  %v1027_v26 = vadd.f32 %v1673_v32, %v808_v20  ;;  %v1721_v55 = vpop.f32.mrb[26].mxu0 }
 0x151   :  { %v1066_v33 = vmax.f32 %v1026_v23, 0.0  ;;  %v1028_v29 = vadd.f32 %v1675_v34, %v810_v24  ;;  %v1724_v57 = vpop.f32.mrb[27].mxu0 }
 0x152   :  { %v1067_v30 = vmax.f32 %v1027_v26, 0.0 }
 0x153   :  { %v1357_v36 = vpack.c.bf16 %v1066_v33, %v1065_v27  ;;  %v1068_v37 = vmax.f32 %v1028_v29, 0.0  ;;  %v680_v38 = vpop.f32.mrb[12].mxu1 }
 0x154   :  { %v814_v39 = vadd.f32 %v813_v42, %v680_v38  ;;  %v682_v40 = vpop.f32.mrb[13].mxu1 }
 0x155   :  { %1221 = vst [vmem:[#allocation8 + $0x20] sm:$0xff] %v1357_v36  ;;  %v1358_v31 = vpack.c.bf16 %v1068_v37, %v1067_v30  ;;  %v816_v41 = vadd.f32 %v1679_v45, %v682_v40  ;;  %v684_v43 = vpop.f32.mrb[14].mxu1 }
 0x156   :  { %v1029_v44 = vadd.f32 %v1673_v32, %v814_v39  ;;  %v818_v46 = vadd.f32 %v1682_v48, %v684_v43  ;;  %v686_v47 = vpop.f32.mrb[15].mxu1  ;;  %v1730_v8 = vpop.f32.mrb[28].mxu0 }
 0x157   :  { %1222 = vst [vmem:[#allocation8 + $0x28] sm:$0xff] %v1358_v31  ;;  %v1030_v50 = vadd.f32 %v1675_v34, %v816_v41  ;;  %v820_v52 = vadd.f32 %v1685_v51, %v686_v47  ;;  %v1734_v12 = vpop.f32.mrb[29].mxu0 }
 0x158   :  { %v1069_v42 = vmax.f32 %v1029_v44, 0.0  ;;  %v1031_v54 = vadd.f32 %v1673_v32, %v818_v46  ;;  %v1737_v14 = vpop.f32.mrb[30].mxu0 }
 0x159   :  { %v1070_v45 = vmax.f32 %v1030_v50, 0.0  ;;  %v1032_v56 = vadd.f32 %v1675_v34, %v820_v52  ;;  %v1740_v16 = vpop.f32.mrb[31].mxu0 }
 0x15a   :  { %v1071_v48 = vmax.f32 %v1031_v54, 0.0 }
 0x15b   :  { %v1359_v58 = vpack.c.bf16 %v1070_v45, %v1069_v42  ;;  %v1072_v59 = vmax.f32 %v1032_v56, 0.0  ;;  %v690_v60 = vpop.f32.mrb[16].mxu1 }
 0x15c   :  { %v824_v61 = vadd.f32 %v1688_v1, %v690_v60  ;;  %v692_v62 = vpop.f32.mrb[17].mxu1 }
 0x15d   :  { %1223 = vst [vmem:[#allocation8 + $0x30] sm:$0xff] %v1359_v58  ;;  %v1360_v51 = vpack.c.bf16 %v1072_v59, %v1071_v48  ;;  %v826_v63 = vadd.f32 %v1691_v4, %v692_v62  ;;  %v694_v2 = vpop.f32.mrb[18].mxu1 }
 0x15e   :  { %v1033_v3 = vadd.f32 %v1673_v32, %v824_v61  ;;  %v828_v5 = vadd.f32 %v1694_v7, %v694_v2  ;;  %v696_v6 = vpop.f32.mrb[19].mxu1  ;;  %v863_v33 = vpop.f32.mrb[32].mxu0 }
 0x15f   :  { %1224 = vst [vmem:[#allocation8 + $0x38] sm:$0xff] %v1360_v51  ;;  %v1034_v9 = vadd.f32 %v1675_v34, %v826_v63  ;;  %v830_v11 = vadd.f32 %v1697_v10, %v696_v6  ;;  %v865_v36 = vpop.f32.mrb[33].mxu0 }
 0x160   :  { %v1073_v1 = vmax.f32 %v1033_v3, 0.0  ;;  %v1035_v13 = vadd.f32 %v1673_v32, %v828_v5  ;;  %v867_v38 = vpop.f32.mrb[34].mxu0 }
 0x161   :  { %v1074_v4 = vmax.f32 %v1034_v9, 0.0  ;;  %v1036_v15 = vadd.f32 %v1675_v34, %v830_v11  ;;  %v869_v40 = vpop.f32.mrb[35].mxu0 }
 0x162   :  { %v1075_v7 = vmax.f32 %v1035_v13, 0.0 }
 0x163   :  { %v1361_v17 = vpack.c.bf16 %v1074_v4, %v1073_v1  ;;  %v1076_v18 = vmax.f32 %v1036_v15, 0.0  ;;  %v700_v19 = vpop.f32.mrb[20].mxu1 }
 0x164   :  { %v834_v0 = vadd.f32 %v1700_v22, %v700_v19  ;;  %v702_v20 = vpop.f32.mrb[21].mxu1 }
 0x165   :  { %1225 = vst [vmem:[#allocation8 + $0x40] sm:$0xff] %v1361_v17  ;;  %v1362_v10 = vpack.c.bf16 %v1076_v18, %v1075_v7  ;;  %v836_v21 = vadd.f32 %v1703_v25, %v702_v20  ;;  %v704_v23 = vpop.f32.mrb[22].mxu1 }
 0x166   :  { %v1037_v24 = vadd.f32 %v1673_v32, %v834_v0  ;;  %v838_v27 = vadd.f32 %v1706_v28, %v704_v23  ;;  %v706_v26 = vpop.f32.mrb[23].mxu1  ;;  %v873_v45 = vpop.f32.mrb[36].mxu0 }
 0x167   :  { %1226 = vst [vmem:[#allocation8 + $0x48] sm:$0xff] %v1362_v10  ;;  %v1038_v29 = vadd.f32 %v1675_v34, %v836_v21  ;;  %v840_v30 = vadd.f32 %v1709_v35, %v706_v26  ;;  %v875_v58 = vpop.f32.mrb[37].mxu0 }
 0x168   :  { %v1077_v37 = vmax.f32 %v1037_v24, 0.0  ;;  %v1039_v22 = vadd.f32 %v1673_v32, %v838_v27  ;;  %v877_v60 = vpop.f32.mrb[38].mxu0 }
 0x169   :  { %v1078_v39 = vmax.f32 %v1038_v29, 0.0  ;;  %v1040_v25 = vadd.f32 %v1675_v34, %v840_v30  ;;  %v879_v62 = vpop.f32.mrb[39].mxu0 }
 0x16a   :  { %v1079_v31 = vmax.f32 %v1039_v22, 0.0 }
 0x16b   :  { %v1363_v41 = vpack.c.bf16 %v1078_v39, %v1077_v37  ;;  %v1080_v43 = vmax.f32 %v1040_v25, 0.0  ;;  %v710_v28 = vpop.f32.mrb[24].mxu1 }
 0x16c   :  { %v844_v44 = vadd.f32 %v1714_v49, %v710_v28  ;;  %v712_v46 = vpop.f32.mrb[25].mxu1 }
 0x16d   :  { %1227 = vst [vmem:[#allocation8 + $0x50] sm:$0xff] %v1363_v41  ;;  %v1364_v47 = vpack.c.bf16 %v1080_v43, %v1079_v31  ;;  %v846_v35 = vadd.f32 %v1718_v53, %v712_v46  ;;  %v714_v50 = vpop.f32.mrb[26].mxu1 }
 0x16e   :  { %v1041_v52 = vadd.f32 %v1673_v32, %v844_v44  ;;  %v848_v42 = vadd.f32 %v1721_v55, %v714_v50  ;;  %v716_v54 = vpop.f32.mrb[27].mxu1 }
 0x16f   :  { %1228 = vst [vmem:[#allocation8 + $0x58] sm:$0xff] %v1364_v47  ;;  %v1042_v56 = vadd.f32 %v1675_v34, %v846_v35  ;;  %v850_v48 = vadd.f32 %v1724_v57, %v716_v54 }
 0x170   :  { %v1081_v59 = vmax.f32 %v1041_v52, 0.0  ;;  %v1043_v49 = vadd.f32 %v1673_v32, %v848_v42 }
 0x171   :  { %v1082_v61 = vmax.f32 %v1042_v56, 0.0  ;;  %v1044_v53 = vadd.f32 %v1675_v34, %v850_v48 }
 0x172   :  { %v1083_v51 = vmax.f32 %v1043_v49, 0.0 }
 0x173   :  { %v1365_v63 = vpack.c.bf16 %v1082_v61, %v1081_v59  ;;  %v1084_v2 = vmax.f32 %v1044_v53, 0.0  ;;  %v720_v55 = vpop.f32.mrb[28].mxu1 }
 0x174   :  { %v854_v3 = vadd.f32 %v1730_v8, %v720_v55  ;;  %v722_v5 = vpop.f32.mrb[29].mxu1 }
 0x175   :  { %1229 = vst [vmem:[#allocation8 + $0x60] sm:$0xff] %v1365_v63  ;;  %v1366_v6 = vpack.c.bf16 %v1084_v2, %v1083_v51  ;;  %v856_v57 = vadd.f32 %v1734_v12, %v722_v5  ;;  %v724_v9 = vpop.f32.mrb[30].mxu1 }
 0x176   :  { %v1045_v11 = vadd.f32 %v1673_v32, %v854_v3  ;;  %v858_v1 = vadd.f32 %v1737_v14, %v724_v9  ;;  %v726_v13 = vpop.f32.mrb[31].mxu1 }
 0x177   :  { %1230 = vst [vmem:[#allocation8 + $0x68] sm:$0xff] %v1366_v6  ;;  %v1046_v4 = vadd.f32 %v1675_v34, %v856_v57  ;;  %v860_v15 = vadd.f32 %v1740_v16, %v726_v13 }
 0x178   :  { %v1085_v7 = vmax.f32 %v1045_v11, 0.0  ;;  %v1047_v17 = vadd.f32 %v1673_v32, %v858_v1 }
 0x179   :  { %v1086_v8 = vmax.f32 %v1046_v4, 0.0  ;;  %v1048_v18 = vadd.f32 %v1675_v34, %v860_v15 }
 0x17a   :  { %v1087_v19 = vmax.f32 %v1047_v17, 0.0 }
 0x17b   :  { %v1367_v0 = vpack.c.bf16 %v1086_v8, %v1085_v7  ;;  %v1088_v12 = vmax.f32 %v1048_v18, 0.0  ;;  %v730_v20 = vpop.f32.mrb[32].mxu1 }
 0x17c   :  { %v864_v10 = vadd.f32 %v863_v33, %v730_v20  ;;  %v732_v21 = vpop.f32.mrb[33].mxu1 }
 0x17d   :  { %1231 = vst [vmem:[#allocation8 + $0x70] sm:$0xff] %v1367_v0  ;;  %v1368_v14 = vpack.c.bf16 %v1088_v12, %v1087_v19  ;;  %v866_v23 = vadd.f32 %v865_v36, %v732_v21  ;;  %v734_v24 = vpop.f32.mrb[34].mxu1 }
 0x17e   :  { %v1049_v27 = vadd.f32 %v1673_v32, %v864_v10  ;;  %v868_v26 = vadd.f32 %v867_v38, %v734_v24  ;;  %v736_v16 = vpop.f32.mrb[35].mxu1 }
 0x17f   :  { %1232 = vst [vmem:[#allocation8 + $0x78] sm:$0xff] %v1368_v14  ;;  %v1050_v29 = vadd.f32 %v1675_v34, %v866_v23  ;;  %v870_v30 = vadd.f32 %v869_v40, %v736_v16 }
 0x180   :  { %v1089_v37 = vmax.f32 %v1049_v27, 0.0  ;;  %v1051_v22 = vadd.f32 %v1673_v32, %v868_v26 }
 0x181   :  { %v1090_v39 = vmax.f32 %v1050_v29, 0.0  ;;  %v1052_v25 = vadd.f32 %v1675_v34, %v870_v30 }
 0x182   :  { %v1091_v33 = vmax.f32 %v1051_v22, 0.0 }
 0x183   :  { %v1369_v31 = vpack.c.bf16 %v1090_v39, %v1089_v37  ;;  %v1092_v41 = vmax.f32 %v1052_v25, 0.0  ;;  %v740_v43 = vpop.f32.mrb[36].mxu1 }
 0x184   :  { %v874_v36 = vadd.f32 %v873_v45, %v740_v43  ;;  %v742_v28 = vpop.f32.mrb[37].mxu1 }
 0x185   :  { %1233 = vst [vmem:[#allocation8 + $0x80] sm:$0xff] %v1369_v31  ;;  %v1370_v44 = vpack.c.bf16 %v1092_v41, %v1091_v33  ;;  %v876_v38 = vadd.f32 %v875_v58, %v742_v28  ;;  %v744_v46 = vpop.f32.mrb[38].mxu1 }
 0x186   :  { %v1053_v47 = vadd.f32 %v1673_v32, %v874_v36  ;;  %v878_v35 = vadd.f32 %v877_v60, %v744_v46  ;;  %v746_v40 = vpop.f32.mrb[39].mxu1 }
 0x187   :  { %1234 = vst [vmem:[#allocation8 + $0x88] sm:$0xff] %v1370_v44  ;;  %v1054_v50 = vadd.f32 %v1675_v34, %v876_v38  ;;  %v880_v52 = vadd.f32 %v879_v62, %v746_v40 }
 0x188   :  { %v1093_v42 = vmax.f32 %v1053_v47, 0.0  ;;  %v1055_v54 = vadd.f32 %v1673_v32, %v878_v35 }
 0x189   :  { %v1094_v56 = vmax.f32 %v1054_v50, 0.0  ;;  %v1056_v48 = vadd.f32 %v1675_v34, %v880_v52 }
 0x18a   :  { %v1095_v45 = vmax.f32 %v1055_v54, 0.0 }
 0x18b   :  { %v1371_v59 = vpack.c.bf16 %v1094_v56, %v1093_v42  ;;  %v1096_v58 = vmax.f32 %v1056_v48, 0.0 }
 0x18d   :  { %1235 = vst [vmem:[#allocation8 + $0x90] sm:$0xff] %v1371_v59  ;;  %v1372_v49 = vpack.c.bf16 %v1096_v58, %v1095_v45 }
 0x18f   :  { %1236 = vst [vmem:[#allocation8 + $0x98] sm:$0xff] %v1372_v49 }
 0x190   :  { %1588 = shalt.err (!%p1585_p6)
}
 0x191   :  { %s1589_s17 = scalar_lea.hbm %s1792_s3, 2560 }
 0x192   :  { %p1590_p7 = scmp.ne.s32.totalorder %s1792_s3, %s1589_s17  ;;  %p1593_p8 = scmp.lt.u32.totalorder %s1589_s17, %s1792_s3 }
 0x194   :  { %p1595_p9 = pnand %p1593_p8, %p1590_p7 }
 0x196   :  { %1598 = shalt.err (!%p1595_p9)
}
 0x197   :  { %1248 = dma.vmem_to_hbm [thread:$0]  %s1243_s13, 2560, %s1792_s3, [#allocation5], %s1609_s0, %s1609_s0, %s1610_s9  }
 0x198   :  { %1603 = dma.done.wait [#allocation5], 2560  }
 0x199   :  { %1604 = vsyncadd [#allocation5], 4294964736 }
 0x19a   :  { %1252 = vsyncpa [#allocation4], 1 }
 0x19b   :  { %1253 = vsyncpa [#allocation7], 1 }
 0x19c   :  { %1254 = vsyncpa [#allocation5], 1 }

</bundles_post_ra>
